<compile_context>
chip_gen: v7x
topology: tpu7x:2x2x1
jax: 0.10.0
libtpu: 0.0.40
codegen_flags: <defaults>
</compile_context>

<pallas_src>
import functools

import jax
import jax.numpy as jnp
from jax.experimental import pallas as pl
from jax.experimental.pallas import tpu as pltpu

_LANE = 128
_SUB = 8


def _round_up(a, m):
    return ((a + m - 1) // m) * m


def _ceil_div(a, b):
    return -(-a // b)


# ----------------------------- Pallas kernel -----------------------------

def _drop_path_kernel(keep_ref, x_ref, o_ref, *, inv_keep):
    """keep_ref: (B,) int32 in SMEM (scalar-prefetched); x/o: (1, tile_r, 128)."""
    b = pl.program_id(0)
    # One scalar select per grid step; the Bernoulli draw was hoisted out.
    scale = jnp.where(keep_ref[b] > 0, inv_keep, 0.0).astype(o_ref.dtype)
    o_ref[...] = x_ref[...] * scale


# ----------------------------- wrapper -----------------------------

def drop_path_pallas(x, drop_prob: float, *, training: bool = False,
                     key=None, seed: int = 0, block_bytes: int = 1 << 20):
    """drop_path(x, drop_prob, training) with the per-sample scale applied in Pallas."""
    if drop_prob == 0.0 or not training:
        return x
    keep_prob = 1.0 - float(drop_prob)
    if keep_prob <= 0.0:
        # PyTorch: bernoulli(0) mask, no rescale -> all zeros.
        return jnp.zeros_like(x)

    B = int(x.shape[0])
    L = 1
    for d in x.shape[1:]:
        L *= int(d)

    # Per-sample Bernoulli(keep_prob), drawn once with jax.random (scalar-prefetched).
    if key is None:
        key = jax.random.PRNGKey(seed)
    keep = jax.random.bernoulli(key, p=keep_prob, shape=(B,)).astype(jnp.int32)

    # Lane-dense layout: (B, rows, 128).  Zero-copy when L is already lane-aligned.
    lp = _round_up(L, _LANE)
    rows = lp // _LANE
    xf = x.reshape(B, L)
    if lp != L:
        # TODO(synk): handle the ragged lane tail with an in-kernel masked store
        # instead of wrapper-side pad + slice (extra HBM round trips for odd shapes).
        xf = jnp.pad(xf, ((0, 0), (0, lp - L)))
    x3 = xf.reshape(B, rows, _LANE)

    # Block size: ~block_bytes per block (1 MiB default -> 2048 f32 / 4096 bf16
    # rows), but keep >= ~4 total grid steps so double-buffering has overlap.
    itemsize = jnp.dtype(x.dtype).itemsize
    tile_rows = max(_SUB, block_bytes // (_LANE * itemsize))
    min_steps = 4
    tiles_per_sample = max(1, _ceil_div(min_steps, B))
    cap = max(_SUB, _round_up(_ceil_div(rows, tiles_per_sample), _SUB))
    tile_r = min(int(tile_rows), cap)
    if tile_r >= rows:
        tile_r = rows                       # single full-extent block per sample (legal)
    else:
        tile_r = _round_up(tile_r, _SUB)    # 8-aligned; ragged last tile handled by Pallas

    grid = (B, pl.cdiv(rows, tile_r))
    blk = pl.BlockSpec((1, tile_r, _LANE), lambda b, t, keep_ref: (b, t, 0))

    out = pl.pallas_call(
        functools.partial(_drop_path_kernel, inv_keep=1.0 / keep_prob),
        out_shape=jax.ShapeDtypeStruct((B, rows, _LANE), x.dtype),
        grid_spec=pltpu.PrefetchScalarGridSpec(
            num_scalar_prefetch=1,
            grid=grid,
            in_specs=[blk],
            out_specs=blk,
        ),
        compiler_params=pltpu.CompilerParams(
            dimension_semantics=("parallel", "parallel")),
    )(keep, x3)

    if lp != L:
        return out.reshape(B, lp)[:, :L].reshape(x.shape)
    return out.reshape(x.shape)


class DropPath:
    """Drop paths (stochastic depth) per sample, main path of residual blocks."""

    def __init__(self, drop_prob: float = 0.0):
        self.drop_prob = float(drop_prob)

    def __call__(self, x, *, training: bool = False, key=None, seed: int = 0):
        return drop_path_pallas(x, self.drop_prob, training=training, key=key, seed=seed)


# ----------------------------- main -----------------------------

if __name__ == "__main__":
    root = jax.random.PRNGKey(0)
    k1, k2 = jax.random.split(root)

    # Small token tensor (B, N, C) as DropPath sees it inside ViT-Adapter blocks.
    B, N, C = 2, 64, 128
    x = jax.random.normal(k1, (B, N, C), jnp.float32)

    mod = DropPath(drop_prob=0.3)

    # --- eval mode / drop_prob = 0 -> exact identity (no kernel) ---
    y_eval = mod(x, training=False)
    assert y_eval is x
    assert drop_path_pallas(x, 0.0, training=True) is x

    # --- training mode: per-sample stochastic depth (lane-aligned fast path) ---
    keep_prob = 1.0 - mod.drop_prob
    y = jax.block_until_ready(mod(x, training=True, seed=42))
    assert y.shape == x.shape and y.dtype == x.dtype
    for b in range(B):
        kept = bool(jnp.allclose(y[b], x[b] / keep_prob, rtol=1e-5, atol=1e-5))
        dropped = bool(jnp.all(y[b] == 0.0))
        assert kept or dropped, "sample is neither kept (scaled) nor fully dropped"

    # --- native-dtype path (bf16, no f32 upcast in kernel) ---
    xb = x.astype(jnp.bfloat16)
    yb = jax.block_until_ready(mod(xb, training=True, seed=42))
    assert yb.shape == xb.shape and yb.dtype == xb.dtype
    for b in range(B):
        kept = bool(jnp.allclose(yb[b].astype(jnp.float32),
                                 xb[b].astype(jnp.float32) / keep_prob,
                                 rtol=2e-2, atol=2e-2))
        dropped = bool(jnp.all(yb[b].astype(jnp.float32) == 0.0))
        assert kept or dropped

    # --- awkward trailing shape exercises the lane-padding path ---
    x2 = jax.random.normal(k2, (2, 5, 7, 9), jnp.float32)
    y2 = jax.block_until_ready(drop_path_pallas(x2, 0.5, training=True, seed=7))
    assert y2.shape == x2.shape
    for b in range(x2.shape[0]):
        kept = bool(jnp.allclose(y2[b], x2[b] / 0.5, rtol=1e-5, atol=1e-5))
        dropped = bool(jnp.all(y2[b] == 0.0))
        assert kept or dropped

    print("KERNEL_OK")
</pallas_src>

<mosaic_0001>
module attributes {stable_mosaic.version = 11 : i64} {
  func.func @_drop_path_kernel(%arg0: i32, %arg1: i32, %arg2: memref<2xi32, #tpu.memory_space<smem>>, %arg3: memref<1x32x128xf32, #tpu.memory_space<vmem>>, %arg4: memref<1x32x128xf32, #tpu.memory_space<vmem>>) attributes {dimension_semantics = [#tpu.dimension_semantics<parallel>, #tpu.dimension_semantics<parallel>], iteration_bounds = array<i64: 2, 2>, scalar_prefetch = 1 : i64, scratch_operands = 0 : i64, tpu.core_type = #tpu.core_type<tc>, window_params = [{transform_indices = @transform_0, window_bounds = array<i64: 1, 32, 128>}, {transform_indices = @transform_1, window_bounds = array<i64: 1, 32, 128>}]} {
    %0 = arith.index_cast %arg0 : i32 to index
    %1 = memref.load %arg2[%0] : memref<2xi32, #tpu.memory_space<smem>>
    %c0_i32 = arith.constant 0 : i32
    %2 = arith.cmpi sgt, %1, %c0_i32 : i32
    %cst = arith.constant 1.42857146 : f32
    %cst_0 = arith.constant 0.000000e+00 : f32
    %3 = arith.select %2, %cst, %cst_0 : f32
    %c0 = arith.constant 0 : index
    %c0_1 = arith.constant 0 : index
    %c0_2 = arith.constant 0 : index
    %4 = vector.load %arg3[%c0, %c0_1, %c0_2] : memref<1x32x128xf32, #tpu.memory_space<vmem>>, vector<1x32x128xf32>
    %5 = vector.broadcast %3 : f32 to vector<1x32x128xf32>
    %6 = arith.mulf %4, %5 : vector<1x32x128xf32>
    %c0_3 = arith.constant 0 : index
    %c0_4 = arith.constant 0 : index
    %c0_5 = arith.constant 0 : index
    %7 = vector.load %arg4[%c0_3, %c0_4, %c0_5] : memref<1x32x128xf32, #tpu.memory_space<vmem>>, vector<1x32x128xf32>
    tpu.vector_store %arg4[%c0_3, %c0_4, %c0_5], %6 {strides = array<i32>} : memref<1x32x128xf32, #tpu.memory_space<vmem>>, vector<1x32x128xf32>,
    return
  }
  func.func @transform_0(%arg0: i32, %arg1: i32, %arg2: memref<2xi32, #tpu.memory_space<smem>>) -> (i32, i32, i32) {
    %c0_i32 = arith.constant 0 : i32
    %c0_i32_0 = arith.constant 0 : i32
    return %arg0, %arg1, %c0_i32 : i32, i32, i32
  }
  func.func @transform_1(%arg0: i32, %arg1: i32, %arg2: memref<2xi32, #tpu.memory_space<smem>>) -> (i32, i32, i32) {
    %c0_i32 = arith.constant 0 : i32
    %c0_i32_0 = arith.constant 0 : i32
    return %arg0, %arg1, %c0_i32 : i32, i32, i32
  }
}

</mosaic_0001>

<bundles_post_ra>
// kernel: tpu_custom_call.1
= control target key start
LH: loop header
LB: loop body
LE: loop exit
PB: predicated region body
PF: predicated region fallthrough
CT: control target
= control target key end

     0   :  { %s754_s0 = inlined_call_operand.hbm [shape: s32[2], index: 0, kind: input, shape index: {}]   ;;  %s755_s1 = inlined_call_operand.hbm [shape: f32[2,64,128], index: 1, kind: input, shape index: {}]   ;;  %s756_s2 = inlined_call_operand.hbm [shape: f32[2,64,128], index: 2, kind: output, shape index: {}]  }
   0x1   :  { %s382_s11 = scalar_lea.hbm %s754_s0, 16 }
   0x2   :  { %p383_p0 = scmp.ne.s32.totalorder %s754_s0, %s382_s11  ;;  %p386_p1 = scmp.lt.u32.totalorder %s382_s11, %s754_s0 }
   0x4   :  { %p388_p2 = pnand %p386_p1, %p383_p0 }
   0x6   :  { %391 = shalt.err (!%p388_p2)  }
   0x7   :  { %s524_s16 = smov [#allocation3]  }
   0x8   :  { %8 = dma.hbm_to_smem %s754_s0, 16, %s524_s16, [#allocation2] }
   0x9   :  { %482 = dma.done.wait [#allocation2], 16 }
   0xa   :  { %483 = vsyncadd [#allocation2], 4294967280 }
   0xb   :  { %10 = sfence }
   0xc   :  { %11 = vsyncpa [#allocation5], 0 }
   0xd   :  { %13 = vsyncpa [#allocation5 + $0x1], 0 }
   0xe   :  { %14 = vsyncpa [#allocation6], 0 }
   0xf   :  { %16 = vsyncpa [#allocation6 + $0x1], 0  ;;  %s558_s19 = smov 0   ;;  %s560_s20 = smov 0  }
  0x10   :  { %s562_s21 = smov 0   ;;  %s564_s22 = smov 0  }
  0x11   :  { %s566_s23 = smov 0   ;;  %s568_s24 = smov 0  }
  0x12   :  { %s570_s0 = smov 0   ;;  %s572_s25 = smov 0  }
  0x13 LB: > { %s282_s26 = sadd.s32 4294967295, %s522_s25   ;;  %s283_s27 = sadd.s32 4294967294, %s522_s25   ;;  %s522_s25 = sphi %s572_s25, %s22_s25   ;;  %s518_s0 = sphi %s570_s0, %s771_s0   ;;  %s514_s24 = sphi %s568_s24, %s770_s24   ;;  %s510_s23 = sphi %s566_s23, %s769_s23   ;;  %s506_s22 = sphi %s564_s22, %s768_s22   ;;  %s502_s21 = sphi %s562_s21, %s767_s21   ;;  %s498_s20 = sphi %s560_s20, %s766_s20   ;;  %s494_s19 = sphi %s558_s19, %s765_s19  }
  0x14   : > { %s31_s28 = sadd.s32 1, %s514_s24  ;;  %s34_s29 = sadd.s32 1, %s518_s0 }
  0x15   : > { %p32_p3 = scmp.ge.s32.totalorder %s31_s28, 2  ;;  %s43_s30 = sadd.s32 1, %s502_s21 }
  0x16   : > { %p50_p4 = scmp.ne.s32.totalorder %s502_s21, %s498_s20  ;;  %p51_p5 = scmp.eq.s32.totalorder %s522_s25, 0 }
  0x17   : > { %s773_s28 = smov (%p32_p3, %s31_s28), 0  ;;  %s775_s29 = smov (!%p32_p3, %s34_s29), %s518_s0 }
  0x18   : > { %s39_s3 = ssub.s32 %s514_s24, %s773_s28  ;;  %p611_p6 = por %p51_p5, %p50_p4 }
  0x19   : > { %p36_p7 = scmp.ge.s32.totalorder %s775_s29, 2  ;;  %p56_p8 = scmp.ne.s32.totalorder %s498_s20, %s494_s19 }
  0x1a   : > { %p57_p9 = scmp.eq.s32.totalorder %s282_s26, 0  ;;  %p82_p10 = scmp.eq.s32.totalorder %s282_s26, 3 }
  0x1b   : > { %s777_s29 = smov (%p36_p7, %s775_s29), 0  ;;  %p88_p13 = scmp.eq.s32.totalorder %s283_s27, 3 }
  0x1c   : > { %p619_p11 = por %p57_p9, %p56_p8  ;;  %p623_p12 = por %p82_p10, %p50_p4 }
  0x1d   : > { %s38_s7 = ssub.s32 %s518_s0, %s777_s29  ;;  %p629_p1 = por %p88_p13, %p56_p8 }
  0x1e   : > { %s760_s6 = scalar_select %p623_p12, 1, 0 }
  0x1f   : > { %s40_s8 = sor.u32 %s39_s3, %s38_s7  ;;  %p311_p2 = scmp.lt.s32.totalorder %s522_s25, 4 }
  0x20   : > { %p41_p0 = scmp.eq.s32.totalorder %s40_s8, 0  ;;  %s108_s10 = sand.u32 1, %s502_s21  }
  0x21   : > { %s761_s9 = scalar_select %p629_p1, 1, 0 }
  0x22   : > { %s636_s11 = scalar_select %p41_p0, %s502_s21, %s43_s30  }
  0x23   : > { %s286_s12 = sshll.u32 %s108_s10, 5  ;;  %s287_s13 = sshll.u32 %s514_s24, 2 }
  0x24   : > { %s288_s14 = sshll.u32 %s518_s0, 3  ;;  %s112_s15 = scalar_lea.vmem [#allocation4], %s286_s12 }
  0x25   : > { %s121_s16 = sshll.u32 %s112_s15, 4  ;;  %s118_s17 = sadd.s32 %s288_s14, %s287_s13  ;;  %s640_s16 = int_to_ptr.vmem [resolvable:$true] %s121_s16 }
  0x26   : > { %s289_s18 = sshll.u32 %s118_s17, 7  ;;  %p644_p3 = pnand %p311_p2, %p611_p6 }
  0x27   : > { %s651_s30 = scalar_lea.hbm %s755_s1, %s289_s18  ;;  %s653_s7 = scalar_lea.sflag [#allocation5], %s108_s10 }
  0x28   : > { %s392_s8 = scalar_lea.hbm %s651_s30, 512  ;;  %p394_p5 = pneg %p644_p3 }
  0x29   : > { %p393_p4 = scmp.ne.s32.totalorder %s651_s30, %s392_s8  ;;  %s397_s13 = scalar_lea.hbm %s755_s1, 2048 }
  0x2a   : > { %p398_p8 = scmp.lt.u32.totalorder %s651_s30, %s755_s1  ;;  %p399_p9 = scmp.lt.u32.totalorder %s397_s13, %s392_s8 }
  0x2b   : > { %p395_p6 = pnand %p394_p5, %p393_p4  ;;  %p401_p13 = scmp.lt.u32.totalorder %s392_s8, %s651_s30 }
  0x2c   : > { %p400_p10 = por %p399_p9, %p398_p8 }
  0x2d   : > { %p396_p7 = pneg %p395_p6 }
  0x2e   : > { %p402_p0 = por %p401_p13, %p400_p10 }
  0x30   : > { %p403_p2 = pnand %p402_p0, %p396_p7 }
  0x32   : > { %406 = shalt.err (!%p403_p2)
}
  0x33   : > { %s407_s10 = scalar_lea.vmem %s640_s16, 512  ;;  %s525_s17 = smov [#allocation4]  }
  0x34   : > { %p408_p4 = scmp.ne.s32.totalorder %s640_s16, %s407_s10  ;;  %s412_s18 = sshll.u32 %s525_s17, 4  ;;  %s413_s18 = int_to_ptr.vmem [resolvable:$false] %s412_s18 }
  0x35   : > { %s414_s27 = scalar_lea.vmem %s413_s18, 1024  ;;  %p415_p12 = scmp.lt.s32.totalorder %s640_s16, %s413_s18 }
  0x36   : > { %p410_p6 = pnand %p408_p4, %p394_p5  ;;  %p416_p8 = scmp.lt.s32.totalorder %s414_s27, %s407_s10 }
  0x38   : > { %p411_p1 = pneg %p410_p6  ;;  %p417_p9 = por %p416_p8, %p415_p12 }
  0x3a   : > { %p418_p10 = pnand %p417_p9, %p411_p1 }
  0x3c   : > { %421 = shalt.err (!%p418_p10)
}
  0x3d   : > { %s526_s3 = smov 128   ;;  %s527_s8 = smov 8  }
  0x3e   : > { %306 = dma.hbm_to_vmem [thread:$0]  (!%p644_p3), %s651_s30, 512, %s640_s16, %s653_s7, %s526_s3, %s526_s3, %s527_s8  }
  0x3f   : > { %p290_p5 = scmp.ge.s32.totalorder %s522_s25, 1  ;;  %p129_p7 = scmp.lt.s32.totalorder %s522_s25, 5 }
  0x41   : > { %p130_p13 = pnand %p290_p5, %p129_p7 }
  0x42   : > { %s684_s4 = sand.u32 (!%p130_p13), 1, %s498_s20  }
  0x43   : > { %133 = sbr.rel (%p130_p13) target bundleno = 105 (0x69), region = 24  ;;  %s291_s12 = sshll.u32 (!%p130_p13), %s684_s4, 5 }
  0x44   : > { %s136_s13 = scalar_lea.sflag (!%p130_p13), [#allocation5], %s684_s4  ;;  %s139_s14 = scalar_lea.vmem (!%p130_p13), [#allocation4], %s291_s12 }
  0x4a   : > { %485 = dma.done.wait (%p619_p11), %s136_s13, 512  }
  0x4b   : > { %487 = vsyncadd (%p619_p11), %s136_s13, 4294966784  ;;  %s160_s16 = sld [smem:[#allocation3 + %s510_s23]]  ;;  %s294_s26 = sshll.u32 %s506_s22, 2  ;;  %v163_v0 = vld [vmem:[%s139_s14] sm:$0xff]  ;;  %v164_v1 = vld [vmem:[%s139_s14 + $0x8] sm:$0xff] }
  0x4c   : > { %s295_s30 = sshll.u32 %s510_s23, 3  ;;  %s157_s15 = scalar_lea.vmem [#allocation7], %s291_s12  ;;  %v165_v2 = vld [vmem:[%s139_s14 + $0x10] sm:$0xff]  ;;  %v166_v3 = vld [vmem:[%s139_s14 + $0x18] sm:$0xff] }
  0x4d   : > { %s189_s7 = sadd.s32 %s295_s30, %s294_s26  ;;  %s192_s10 = sshll.u32 %s157_s15, 4  ;;  %s695_s10 = int_to_ptr.vmem [resolvable:$true] %s192_s10 }
  0x4e   : > { %s296_s17 = sshll.u32 %s189_s7, 7  ;;  %s177_s27 = scalar_lea.sflag [#allocation6], %s684_s4 }
  0x4f   : > { %s700_s5 = scalar_lea.hbm %s756_s2, %s296_s17  ;;  %s422_s3 = scalar_lea.vmem %s695_s10, 512 }
  0x50   : > { %p423_p11 = scmp.ne.s32.totalorder %s695_s10, %s422_s3  ;;  %p763_p1 = scmp.ne.s32.totalorder %s760_s6, 0 }
  0x51   : > { %p161_p12 = scmp.gt.s32.totalorder %s160_s16, 0  ;;  %s528_s8 = smov [#allocation7]  }
  0x52   : > { %p424_p3 = pnand %p423_p11, %p763_p1  ;;  %s426_s12 = sshll.u32 %s528_s8, 4  ;;  %s427_s12 = int_to_ptr.vmem [resolvable:$false] %s426_s12 }
  0x53   : > { %s162_s18 = scalar_select %p161_p12, 1.4285715, 0.0 }
  0x54   : > { %p425_p0 = pneg %p424_p3  ;;  %s428_s13 = scalar_lea.vmem %s427_s12, 1024 }
  0x55   : > { %v167_v4 = vstv %s162_s18  ;;  %p429_p2 = scmp.lt.s32.totalorder %s695_s10, %s427_s12  ;;  %p430_p4 = scmp.lt.s32.totalorder %s428_s13, %s422_s3 }
  0x56   : > { %v168_v5 = vmul.f32 %v167_v4, %v163_v0  ;;  %v169_v6 = vmul.f32 %v167_v4, %v164_v1  ;;  %v170_v7 = vmul.f32 %v167_v4, %v165_v2  ;;  %v171_v8 = vmul.f32 %v167_v4, %v166_v3 }
  0x57   : > { %p431_p6 = por %p430_p4, %p429_p2 }
  0x58   : > { %172 = vst [vmem:[%s157_s15] sm:$0xff] %v168_v5  ;;  %173 = vst [vmem:[%s157_s15 + $0x8] sm:$0xff] %v169_v6 }
  0x59   : > { %174 = vst [vmem:[%s157_s15 + $0x10] sm:$0xff] %v170_v7  ;;  %175 = vst [vmem:[%s157_s15 + $0x18] sm:$0xff] %v171_v8  ;;  %p432_p8 = pnand %p431_p6, %p425_p0 }
  0x5b   : > { %435 = shalt.err (!%p432_p8)
}
  0x5c   : > { %s436_s14 = scalar_lea.hbm %s700_s5, 512  ;;  %s440_s30 = scalar_lea.hbm %s756_s2, 2048 }
  0x5d   : > { %p437_p9 = scmp.ne.s32.totalorder %s700_s5, %s436_s14  ;;  %p441_p7 = scmp.lt.u32.totalorder %s700_s5, %s756_s2 }
  0x5e   : > { %p442_p13 = scmp.lt.u32.totalorder %s440_s30, %s436_s14  ;;  %p444_p11 = scmp.lt.u32.totalorder %s436_s14, %s700_s5 }
  0x5f   : > { %p438_p10 = pnand %p437_p9, %p763_p1 }
  0x60   : > { %p443_p12 = por %p442_p13, %p441_p7 }
  0x61   : > { %p439_p5 = pneg %p438_p10 }
  0x62   : > { %p445_p3 = por %p444_p11, %p443_p12 }
  0x64   : > { %p446_p0 = pnand %p445_p3, %p439_p5 }
  0x66   : > { %449 = shalt.err (!%p446_p0)
}
  0x67   : > { %s529_s17 = smov 128   ;;  %s530_s18 = smov 8  }
  0x68   : > { %301 = dma.vmem_to_hbm [thread:$0]  (%p763_p1), %s695_s10, 512, %s700_s5, %s177_s27, %s529_s17, %s529_s17, %s530_s18  }
  0x69 PF: > { %p312_p2 = scmp.ge.s32.totalorder %s522_s25, 2  ;;  %s207_s22 = sand.u32 1, %s494_s19  }
  0x6a   : > { %p764_p4 = scmp.ne.s32.totalorder %s761_s9, 0  ;;  %s208_s23 = scalar_lea.sflag [#allocation6], %s207_s22 }
  0x6c   : > { %p308_p6 = pnand %p312_p2, %p764_p4 }
  0x6e   : > { %489 = dma.done.wait (!%p308_p6), %s208_s23, 512  }
  0x6f   : > { %491 = vsyncadd (!%p308_p6), %s208_s23, 4294966784  ;;  %s22_s25 = sadd.s32 1, %s522_s25   ;;  %s765_s19 = smov %s498_s20 }
  0x70   : > { %p19_p8 = scmp.ge.s32.totalorder %s22_s25, 6   ;;  %s766_s20 = smov %s502_s21 }
  0x71   : > { %s767_s21 = smov %s636_s11  ;;  %s768_s22 = smov %s514_s24 }
  0x72   : > { %s769_s23 = smov %s518_s0  ;;  %s770_s24 = smov %s773_s28 }
  0x73   : > { %s771_s0 = smov %s777_s29  ;;  %21 = sbr.rel (!%p19_p8) target bundleno = 19 (0x13), region = 69 }
  0x7a   :  { %213 = vsyncpa [#allocation5], 1 }
  0x7b   :  { %215 = vsyncpa [#allocation5 + $0x1], 1 }
  0x7c   :  { %216 = vsyncpa [#allocation6], 1 }
  0x7d   :  { %218 = vsyncpa [#allocation6 + $0x1], 1 }

</bundles_post_ra>
